<compile_context>
chip_gen: v7x
topology: tpu7x:2x2x1
jax: 0.10.0
libtpu: 0.0.40
codegen_flags: <defaults>
</compile_context>

<pallas_src>
import functools
import math

import jax
import jax.numpy as jnp
import numpy as np
from jax.experimental import pallas as pl
from jax.experimental.pallas import tpu as pltpu


def _timestep_embedder_kernel(t_ref, w1_ref, b1_ref, w2_ref, b2_ref, out_ref,
                              *, half, freq_scale, bf16_silu):
    """One row-tile of the TimestepEmbedder forward.

    t_ref:   (bm, 1)        f32 timesteps
    w1_ref:  (2*half, Hp)   bf16; rows [0:half] multiply cos, [half:] sin
    b1_ref:  (1, Hp)        f32
    w2_ref:  (Hp, Hp)       bf16
    b2_ref:  (1, Hp)        f32
    out_ref: (bm, Hp)       f32
    """
    t = t_ref[...].astype(jnp.float32)                              # (bm, 1)

    # freqs = exp(-log(max_period) * arange(half) / half), built in-kernel.
    i = jax.lax.broadcasted_iota(jnp.int32, (1, half), 1).astype(jnp.float32)
    freqs = jnp.exp(i * freq_scale)                                 # (1, half)
    args = t * freqs                                                # (bm, half)

    # embedding = cat([cos(args), sin(args)], -1); the concat is folded into
    # the first matmul by splitting w1 into its cos/sin row-halves.  Operands
    # are bf16 -> native MXU path; accumulation is f32.
    cos_a = jnp.cos(args).astype(jnp.bfloat16)
    sin_a = jnp.sin(args).astype(jnp.bfloat16)
    h = (jnp.dot(cos_a, w1_ref[:half, :], preferred_element_type=jnp.float32)
         + jnp.dot(sin_a, w1_ref[half:, :], preferred_element_type=jnp.float32)
         + b1_ref[...])                                             # f32 (bm, Hp)

    # SiLU.  bf16 elementwise on v6e/v7x (bf16 VPU/EUP), f32 on v5e; the
    # second-matmul operand is bf16 in both cases.
    if bf16_silu:
        hb = h.astype(jnp.bfloat16)
        h_act = hb * jax.nn.sigmoid(hb)                             # bf16
    else:
        h_act = (h * jax.nn.sigmoid(h)).astype(jnp.bfloat16)        # f32 math

    out = (jnp.dot(h_act, w2_ref[...], preferred_element_type=jnp.float32)
           + b2_ref[...])
    out_ref[...] = out.astype(out_ref.dtype)


def _pad_axis(x, mult, axis):
    pad = (-x.shape[axis]) % mult
    if pad == 0:
        return x
    widths = [(0, 0)] * x.ndim
    widths[axis] = (0, pad)
    return jnp.pad(x, widths)


def _default_bf16_silu():
    """bf16 elementwise SiLU only on chips with a bf16 VPU/EUP (not v5)."""
    try:
        kind = jax.devices()[0].device_kind.lower()
        return "v5" not in kind
    except Exception:  # pragma: no cover - conservative default
        return False


def timestep_embedder(t, params, frequency_embedding_size=256,
                      max_period=10000, weight_dtype=jnp.bfloat16,
                      bf16_silu=None):
    """t: (N,) -> (N, hidden) float32, matching the PyTorch TimestepEmbedder."""
    w1, b1, w2, b2 = params
    assert frequency_embedding_size % 2 == 0  # dim%2 zero-pad branch is a no-op
    half = frequency_embedding_size // 2
    # Keep the cos/sin row-split of w1 a free bf16 sublane-aligned view.
    assert half % 16 == 0, "frequency_embedding_size/2 must be a multiple of 16"
    n = t.shape[0]
    hidden = w2.shape[1]
    if bf16_silu is None:
        bf16_silu = _default_bf16_silu()

    # Lane-dense hidden: zero-pad to a multiple of 128. Zero cols of w1/b1 give
    # zero h (SiLU(0)=0), zero rows of w2 contribute nothing, zero cols of
    # w2/b2 give zero output columns which are sliced away below.
    hp = ((hidden + 127) // 128) * 128
    w1p = _pad_axis(w1, 128, 1).astype(weight_dtype)
    w2p = _pad_axis(_pad_axis(w2, 128, 0), 128, 1).astype(weight_dtype)
    b1p = _pad_axis(b1.reshape(1, hidden).astype(jnp.float32), 128, 1)
    b2p = _pad_axis(b2.reshape(1, hidden).astype(jnp.float32), 128, 1)

    # Sublane-friendly row count + row tiling (parallel grid -> both TCs on v7x
    # once there is more than one step). Weights dominate DMA at small N, so a
    # single step is preferred there; at large N the 512-row tiles amortize the
    # ~0.35us/step overhead.
    t2d = _pad_axis(t.astype(jnp.float32).reshape(n, 1), 8, 0)
    pn = t2d.shape[0]
    block_rows = pn if pn <= 512 else 512
    if pn % block_rows:
        t2d = _pad_axis(t2d, block_rows, 0)
        pn = t2d.shape[0]
    grid = (pn // block_rows,)

    wbytes = jnp.dtype(weight_dtype).itemsize
    weight_vmem = (w1p.size + w2p.size) * wbytes + (b1p.size + b2p.size) * 4
    stream_vmem = 2 * block_rows * 4 + 2 * block_rows * hp * 4  # t + out (dbl buf)
    vmem_limit = None
    if weight_vmem + stream_vmem > 30 * 1024 * 1024:
        vmem_limit = min(int(1.5 * (weight_vmem + stream_vmem)), 120 * 1024 * 1024)
    # TODO(synk): for hp >~ 2816 (v7x 64 MiB VMEM) tile w2/b2/out over 128-col
    # blocks instead of keeping w2 whole-resident.

    cost = pl.CostEstimate(
        flops=2 * pn * (frequency_embedding_size * hp + hp * hp),
        transcendentals=pn * (frequency_embedding_size + hp) + grid[0] * half,
        bytes_accessed=(w1p.size + w2p.size) * wbytes
                       + (b1p.size + b2p.size + t2d.size + pn * hp) * 4,
    )

    kernel = functools.partial(_timestep_embedder_kernel, half=half,
                               freq_scale=-math.log(max_period) / half,
                               bf16_silu=bool(bf16_silu))

    def run(single_buffer_weights):
        # Weight/bias blocks never change index across the grid; single-buffer
        # them to halve their VMEM footprint when supported.
        wkw = ({"pipeline_mode": pl.Buffered(1)} if single_buffer_weights else {})
        in_specs = [
            pl.BlockSpec((block_rows, 1), lambda i: (i, 0)),                        # t
            pl.BlockSpec((frequency_embedding_size, hp), lambda i: (0, 0), **wkw),  # w1
            pl.BlockSpec((1, hp), lambda i: (0, 0), **wkw),                         # b1
            pl.BlockSpec((hp, hp), lambda i: (0, 0), **wkw),                        # w2
            pl.BlockSpec((1, hp), lambda i: (0, 0), **wkw),                         # b2
        ]
        return pl.pallas_call(
            kernel,
            out_shape=jax.ShapeDtypeStruct((pn, hp), jnp.float32),
            grid=grid,
            in_specs=in_specs,
            out_specs=pl.BlockSpec((block_rows, hp), lambda i: (i, 0)),
            compiler_params=pltpu.CompilerParams(
                dimension_semantics=("parallel",),
                vmem_limit_bytes=vmem_limit),
            cost_estimate=cost,
        )(t2d, w1p, b1p, w2p, b2p)

    try:
        out = run(True)
    except Exception:
        # Fallback for jax builds that reject pipeline_mode on pallas_call
        # BlockSpecs; default double-buffering is still correct.
        out = run(False)

    return out[:n, :hidden]


def init_params(key, hidden_size, frequency_embedding_size=256):
    """Deterministic synthetic parameter init (Linear weights + biases), f32."""
    k1, k2, k3, k4 = jax.random.split(key, 4)
    scale1 = 1.0 / math.sqrt(frequency_embedding_size)
    scale2 = 1.0 / math.sqrt(hidden_size)
    w1 = jax.random.uniform(k1, (frequency_embedding_size, hidden_size),
                            jnp.float32, -scale1, scale1)
    b1 = jax.random.uniform(k2, (hidden_size,), jnp.float32, -scale1, scale1)
    w2 = jax.random.uniform(k3, (hidden_size, hidden_size),
                            jnp.float32, -scale2, scale2)
    b2 = jax.random.uniform(k4, (hidden_size,), jnp.float32, -scale2, scale2)
    return w1, b1, w2, b2


def reference_forward(t, params, frequency_embedding_size=256, max_period=10000):
    """Pure-JAX reference mirroring the PyTorch module (full f32 matmuls)."""
    w1, b1, w2, b2 = params
    half = frequency_embedding_size // 2
    freqs = jnp.exp(
        -math.log(max_period) * jnp.arange(half, dtype=jnp.float32) / half)
    args = t.astype(jnp.float32)[:, None] * freqs[None]
    emb = jnp.concatenate([jnp.cos(args), jnp.sin(args)], axis=-1)
    h = jnp.dot(emb, w1, precision=jax.lax.Precision.HIGHEST) + b1
    h = h * jax.nn.sigmoid(h)
    return jnp.dot(h, w2, precision=jax.lax.Precision.HIGHEST) + b2


if __name__ == "__main__":
    key = jax.random.PRNGKey(0)
    k_t, k_p = jax.random.split(key)

    N = 8            # batch of timesteps (sublane-friendly)
    HIDDEN = 128     # hidden_size (lane-dense)
    FREQ_DIM = 256   # frequency_embedding_size (module default)

    t = jax.random.uniform(k_t, (N,), jnp.float32, 0.0, 1000.0)
    params = init_params(k_p, HIDDEN, FREQ_DIM)

    out = jax.block_until_ready(timestep_embedder(t, params, FREQ_DIM))

    # Check vs. the pure-f32 PyTorch-equivalent reference.  The kernel stores
    # weights and MXU operands in bf16 (f32 accumulation), so tolerances are
    # set to cover ~bf16 rounding of the two matmuls.
    ref = reference_forward(t, params, FREQ_DIM)
    np.testing.assert_allclose(np.asarray(out), np.asarray(ref),
                               rtol=2e-2, atol=2e-2)

    assert out.shape == (N, HIDDEN) and out.dtype == jnp.float32
    print("KERNEL_OK")
</pallas_src>

<mosaic_0001>
module attributes {stable_mosaic.version = 11 : i64} {
  func.func @_timestep_embedder_kernel(%arg0: i32, %arg1: memref<8x1xf32, #tpu.memory_space<vmem>>, %arg2: memref<256x128xbf16, #tpu.memory_space<vmem>>, %arg3: memref<1x128xf32, #tpu.memory_space<vmem>>, %arg4: memref<128x128xbf16, #tpu.memory_space<vmem>>, %arg5: memref<1x128xf32, #tpu.memory_space<vmem>>, %arg6: memref<8x128xf32, #tpu.memory_space<vmem>>) attributes {dimension_semantics = [#tpu.dimension_semantics<parallel>], iteration_bounds = array<i64: 1>, scalar_prefetch = 0 : i64, scratch_operands = 0 : i64, tpu.core_type = #tpu.core_type<tc>, window_params = [{transform_indices = @transform_0, window_bounds = array<i64: 8, 1>}, {pipeline_mode = #tpu.pipeline_mode<synchronous>, transform_indices = @transform_1, window_bounds = array<i64: 256, 128>}, {pipeline_mode = #tpu.pipeline_mode<synchronous>, transform_indices = @transform_2, window_bounds = array<i64: 1, 128>}, {pipeline_mode = #tpu.pipeline_mode<synchronous>, transform_indices = @transform_3, window_bounds = array<i64: 128, 128>}, {pipeline_mode = #tpu.pipeline_mode<synchronous>, transform_indices = @transform_4, window_bounds = array<i64: 1, 128>}, {transform_indices = @transform_5, window_bounds = array<i64: 8, 128>}]} {
    %c0 = arith.constant 0 : index
    %c0_0 = arith.constant 0 : index
    %0 = vector.load %arg1[%c0, %c0_0] : memref<8x1xf32, #tpu.memory_space<vmem>>, vector<8x1xf32>
    %1 = tpu.iota {dimensions = array<i32: 1>} : vector<1x128xi32>
    %2 = arith.sitofp %1 : vector<1x128xi32> to vector<1x128xf32>
    %cst = arith.constant -0.0719557852 : f32
    %3 = vector.broadcast %cst : f32 to vector<1x128xf32>
    %4 = arith.mulf %2, %3 : vector<1x128xf32>
    %5 = math.exp %4 : vector<1x128xf32>
    %6 = vector.broadcast %0 : vector<8x1xf32> to vector<8x128xf32>
    %7 = vector.broadcast %5 : vector<1x128xf32> to vector<8x128xf32>
    %8 = arith.mulf %6, %7 : vector<8x128xf32>
    %9 = math.cos %8 : vector<8x128xf32>
    %10 = arith.truncf %9 : vector<8x128xf32> to vector<8x128xbf16>
    %11 = math.sin %8 : vector<8x128xf32>
    %12 = arith.truncf %11 : vector<8x128xf32> to vector<8x128xbf16>
    %c0_1 = arith.constant 0 : index
    %c0_2 = arith.constant 0 : index
    %13 = vector.load %arg2[%c0_1, %c0_2] : memref<256x128xbf16, #tpu.memory_space<vmem>>, vector<128x128xbf16>
    %cst_3 = arith.constant dense<0.000000e+00> : vector<8x128xf32>
    %14 = tpu.matmul %10, %13, %cst_3 {dimension_numbers = #tpu.dot_dimension_numbers<[1], [0], [0], [1], [0, 0, 1, 1], [], []>} : vector<8x128xbf16>, vector<128x128xbf16>, vector<8x128xf32> -> vector<8x128xf32>
    %c128 = arith.constant 128 : index
    %c0_4 = arith.constant 0 : index
    %15 = vector.load %arg2[%c128, %c0_4] : memref<256x128xbf16, #tpu.memory_space<vmem>>, vector<128x128xbf16>
    %cst_5 = arith.constant dense<0.000000e+00> : vector<8x128xf32>
    %16 = tpu.matmul %12, %15, %cst_5 {dimension_numbers = #tpu.dot_dimension_numbers<[1], [0], [0], [1], [0, 0, 1, 1], [], []>} : vector<8x128xbf16>, vector<128x128xbf16>, vector<8x128xf32> -> vector<8x128xf32>
    %17 = arith.addf %14, %16 : vector<8x128xf32>
    %c0_6 = arith.constant 0 : index
    %c0_7 = arith.constant 0 : index
    %18 = vector.load %arg3[%c0_6, %c0_7] : memref<1x128xf32, #tpu.memory_space<vmem>>, vector<1x128xf32>
    %19 = vector.broadcast %18 : vector<1x128xf32> to vector<8x128xf32>
    %20 = arith.addf %17, %19 : vector<8x128xf32>
    %21 = arith.truncf %20 : vector<8x128xf32> to vector<8x128xbf16>
    %22 = arith.negf %21 : vector<8x128xbf16>
    %23 = math.exp %22 : vector<8x128xbf16>
    %cst_8 = arith.constant 1.000000e+00 : bf16
    %24 = vector.broadcast %cst_8 : bf16 to vector<8x128xbf16>
    %25 = arith.addf %24, %23 : vector<8x128xbf16>
    %26 = arith.divf %24, %25 : vector<8x128xbf16>
    %27 = arith.mulf %21, %26 : vector<8x128xbf16>
    %c0_9 = arith.constant 0 : index
    %c0_10 = arith.constant 0 : index
    %28 = vector.load %arg4[%c0_9, %c0_10] : memref<128x128xbf16, #tpu.memory_space<vmem>>, vector<128x128xbf16>
    %cst_11 = arith.constant dense<0.000000e+00> : vector<8x128xf32>
    %29 = tpu.matmul %27, %28, %cst_11 {dimension_numbers = #tpu.dot_dimension_numbers<[1], [0], [0], [1], [0, 0, 1, 1], [], []>} : vector<8x128xbf16>, vector<128x128xbf16>, vector<8x128xf32> -> vector<8x128xf32>
    %c0_12 = arith.constant 0 : index
    %c0_13 = arith.constant 0 : index
    %30 = vector.load %arg5[%c0_12, %c0_13] : memref<1x128xf32, #tpu.memory_space<vmem>>, vector<1x128xf32>
    %31 = vector.broadcast %30 : vector<1x128xf32> to vector<8x128xf32>
    %32 = arith.addf %29, %31 : vector<8x128xf32>
    %c0_14 = arith.constant 0 : index
    %c0_15 = arith.constant 0 : index
    %33 = vector.load %arg6[%c0_14, %c0_15] : memref<8x128xf32, #tpu.memory_space<vmem>>, vector<8x128xf32>
    tpu.vector_store %arg6[%c0_14, %c0_15], %32 {strides = array<i32>} : memref<8x128xf32, #tpu.memory_space<vmem>>, vector<8x128xf32>,
    return
  }
  func.func @transform_0(%arg0: i32) -> (i32, i32) {
    %c0_i32 = arith.constant 0 : i32
    %c0_i32_0 = arith.constant 0 : i32
    return %arg0, %c0_i32 : i32, i32
  }
  func.func @transform_1(%arg0: i32) -> (i32, i32) {
    %c0_i32 = arith.constant 0 : i32
    %c0_i32_0 = arith.constant 0 : i32
    %c0_i32_1 = arith.constant 0 : i32
    return %c0_i32, %c0_i32_0 : i32, i32
  }
  func.func @transform_2(%arg0: i32) -> (i32, i32) {
    %c0_i32 = arith.constant 0 : i32
    %c0_i32_0 = arith.constant 0 : i32
    %c0_i32_1 = arith.constant 0 : i32
    return %c0_i32, %c0_i32_0 : i32, i32
  }
  func.func @transform_3(%arg0: i32) -> (i32, i32) {
    %c0_i32 = arith.constant 0 : i32
    %c0_i32_0 = arith.constant 0 : i32
    %c0_i32_1 = arith.constant 0 : i32
    return %c0_i32, %c0_i32_0 : i32, i32
  }
  func.func @transform_4(%arg0: i32) -> (i32, i32) {
    %c0_i32 = arith.constant 0 : i32
    %c0_i32_0 = arith.constant 0 : i32
    %c0_i32_1 = arith.constant 0 : i32
    return %c0_i32, %c0_i32_0 : i32, i32
  }
  func.func @transform_5(%arg0: i32) -> (i32, i32) {
    %c0_i32 = arith.constant 0 : i32
    %c0_i32_0 = arith.constant 0 : i32
    return %arg0, %c0_i32 : i32, i32
  }
}

module attributes {stable_mosaic.version = 11 : i64} {
  func.func @_timestep_embedder_kernel(%arg0: i32, %arg1: memref<8x1xf32, #tpu.memory_space<vmem>>, %arg2: memref<256x128xbf16, #tpu.memory_space<vmem>>, %arg3: memref<1x128xf32, #tpu.memory_space<vmem>>, %arg4: memref<128x128xbf16, #tpu.memory_space<vmem>>, %arg5: memref<1x128xf32, #tpu.memory_space<vmem>>, %arg6: memref<8x128xf32, #tpu.memory_space<vmem>>) attributes {dimension_semantics = [#tpu.dimension_semantics<parallel>], iteration_bounds = array<i64: 1>, scalar_prefetch = 0 : i64, scratch_operands = 0 : i64, tpu.core_type = #tpu.core_type<tc>, window_params = [{transform_indices = @transform_0, window_bounds = array<i64: 8, 1>}, {pipeline_mode = #tpu.pipeline_mode<synchronous>, transform_indices = @transform_1, window_bounds = array<i64: 256, 128>}, {pipeline_mode = #tpu.pipeline_mode<synchronous>, transform_indices = @transform_2, window_bounds = array<i64: 1, 128>}, {pipeline_mode = #tpu.pipeline_mode<synchronous>, transform_indices = @transform_3, window_bounds = array<i64: 128, 128>}, {pipeline_mode = #tpu.pipeline_mode<synchronous>, transform_indices = @transform_4, window_bounds = array<i64: 1, 128>}, {transform_indices = @transform_5, window_bounds = array<i64: 8, 128>}]} {
    %c0 = arith.constant 0 : index
    %c0_0 = arith.constant 0 : index
    %0 = vector.load %arg1[%c0, %c0_0] : memref<8x1xf32, #tpu.memory_space<vmem>>, vector<8x1xf32>
    %1 = tpu.iota {dimensions = array<i32: 1>} : vector<1x128xi32>
    %2 = arith.sitofp %1 : vector<1x128xi32> to vector<1x128xf32>
    %cst = arith.constant -0.0719557852 : f32
    %3 = vector.broadcast %cst : f32 to vector<1x128xf32>
    %4 = arith.mulf %2, %3 : vector<1x128xf32>
    %5 = math.exp %4 : vector<1x128xf32>
    %6 = vector.broadcast %0 : vector<8x1xf32> to vector<8x128xf32>
    %7 = vector.broadcast %5 : vector<1x128xf32> to vector<8x128xf32>
    %8 = arith.mulf %6, %7 : vector<8x128xf32>
    %9 = math.cos %8 : vector<8x128xf32>
    %10 = arith.truncf %9 : vector<8x128xf32> to vector<8x128xbf16>
    %11 = math.sin %8 : vector<8x128xf32>
    %12 = arith.truncf %11 : vector<8x128xf32> to vector<8x128xbf16>
    %c0_1 = arith.constant 0 : index
    %c0_2 = arith.constant 0 : index
    %13 = vector.load %arg2[%c0_1, %c0_2] : memref<256x128xbf16, #tpu.memory_space<vmem>>, vector<128x128xbf16>
    %cst_3 = arith.constant dense<0.000000e+00> : vector<8x128xf32>
    %14 = tpu.matmul %10, %13, %cst_3 {dimension_numbers = #tpu.dot_dimension_numbers<[1], [0], [0], [1], [0, 0, 1, 1], [], []>} : vector<8x128xbf16>, vector<128x128xbf16>, vector<8x128xf32> -> vector<8x128xf32>
    %c128 = arith.constant 128 : index
    %c0_4 = arith.constant 0 : index
    %15 = vector.load %arg2[%c128, %c0_4] : memref<256x128xbf16, #tpu.memory_space<vmem>>, vector<128x128xbf16>
    %cst_5 = arith.constant dense<0.000000e+00> : vector<8x128xf32>
    %16 = tpu.matmul %12, %15, %cst_5 {dimension_numbers = #tpu.dot_dimension_numbers<[1], [0], [0], [1], [0, 0, 1, 1], [], []>} : vector<8x128xbf16>, vector<128x128xbf16>, vector<8x128xf32> -> vector<8x128xf32>
    %17 = arith.addf %14, %16 : vector<8x128xf32>
    %c0_6 = arith.constant 0 : index
    %c0_7 = arith.constant 0 : index
    %18 = vector.load %arg3[%c0_6, %c0_7] : memref<1x128xf32, #tpu.memory_space<vmem>>, vector<1x128xf32>
    %19 = vector.broadcast %18 : vector<1x128xf32> to vector<8x128xf32>
    %20 = arith.addf %17, %19 : vector<8x128xf32>
    %21 = arith.truncf %20 : vector<8x128xf32> to vector<8x128xbf16>
    %22 = arith.negf %21 : vector<8x128xbf16>
    %23 = math.exp %22 : vector<8x128xbf16>
    %cst_8 = arith.constant 1.000000e+00 : bf16
    %24 = vector.broadcast %cst_8 : bf16 to vector<8x128xbf16>
    %25 = arith.addf %24, %23 : vector<8x128xbf16>
    %26 = arith.divf %24, %25 : vector<8x128xbf16>
    %27 = arith.mulf %21, %26 : vector<8x128xbf16>
    %c0_9 = arith.constant 0 : index
    %c0_10 = arith.constant 0 : index
    %28 = vector.load %arg4[%c0_9, %c0_10] : memref<128x128xbf16, #tpu.memory_space<vmem>>, vector<128x128xbf16>
    %cst_11 = arith.constant dense<0.000000e+00> : vector<8x128xf32>
    %29 = tpu.matmul %27, %28, %cst_11 {dimension_numbers = #tpu.dot_dimension_numbers<[1], [0], [0], [1], [0, 0, 1, 1], [], []>} : vector<8x128xbf16>, vector<128x128xbf16>, vector<8x128xf32> -> vector<8x128xf32>
    %c0_12 = arith.constant 0 : index
    %c0_13 = arith.constant 0 : index
    %30 = vector.load %arg5[%c0_12, %c0_13] : memref<1x128xf32, #tpu.memory_space<vmem>>, vector<1x128xf32>
    %31 = vector.broadcast %30 : vector<1x128xf32> to vector<8x128xf32>
    %32 = arith.addf %29, %31 : vector<8x128xf32>
    %c0_14 = arith.constant 0 : index
    %c0_15 = arith.constant 0 : index
    %33 = vector.load %arg6[%c0_14, %c0_15] : memref<8x128xf32, #tpu.memory_space<vmem>>, vector<8x128xf32>
    tpu.vector_store %arg6[%c0_14, %c0_15], %32 {strides = array<i32>} : memref<8x128xf32, #tpu.memory_space<vmem>>, vector<8x128xf32>,
    return
  }
  func.func @transform_0(%arg0: i32) -> (i32, i32) {
    %c0_i32 = arith.constant 0 : i32
    %c0_i32_0 = arith.constant 0 : i32
    return %arg0, %c0_i32 : i32, i32
  }
  func.func @transform_1(%arg0: i32) -> (i32, i32) {
    %c0_i32 = arith.constant 0 : i32
    %c0_i32_0 = arith.constant 0 : i32
    %c0_i32_1 = arith.constant 0 : i32
    return %c0_i32, %c0_i32_0 : i32, i32
  }
  func.func @transform_2(%arg0: i32) -> (i32, i32) {
    %c0_i32 = arith.constant 0 : i32
    %c0_i32_0 = arith.constant 0 : i32
    %c0_i32_1 = arith.constant 0 : i32
    return %c0_i32, %c0_i32_0 : i32, i32
  }
  func.func @transform_3(%arg0: i32) -> (i32, i32) {
    %c0_i32 = arith.constant 0 : i32
    %c0_i32_0 = arith.constant 0 : i32
    %c0_i32_1 = arith.constant 0 : i32
    return %c0_i32, %c0_i32_0 : i32, i32
  }
  func.func @transform_4(%arg0: i32) -> (i32, i32) {
    %c0_i32 = arith.constant 0 : i32
    %c0_i32_0 = arith.constant 0 : i32
    %c0_i32_1 = arith.constant 0 : i32
    return %c0_i32, %c0_i32_0 : i32, i32
  }
  func.func @transform_5(%arg0: i32) -> (i32, i32) {
    %c0_i32 = arith.constant 0 : i32
    %c0_i32_0 = arith.constant 0 : i32
    return %arg0, %c0_i32 : i32, i32
  }
}

</mosaic_0001>

<bundles_post_ra>
// kernel: tpu_custom_call.1
= control target key start
LH: loop header
LB: loop body
LE: loop exit
PB: predicated region body
PF: predicated region fallthrough
CT: control target
= control target key end

     0   :  { %10 = vsyncpa [#allocation3], 0  ;;  %s1013_s0 = inlined_call_operand.vmem [shape: f32[8,1], index: 0, kind: input, shape index: {}]   ;;  %s1014_s1 = inlined_call_operand.hbm [shape: bf16[256,128], index: 1, kind: input, shape index: {}]   ;;  %s1015_s2 = inlined_call_operand.vmem [shape: f32[1,128], index: 2, kind: input, shape index: {}]   ;;  %s1016_s3 = inlined_call_operand.hbm [shape: bf16[128,128], index: 3, kind: input, shape index: {}]   ;;  %s1017_s4 = inlined_call_operand.vmem [shape: f32[1,128], index: 4, kind: input, shape index: {}]   ;;  %s1018_s5 = inlined_call_operand.hbm [shape: f32[8,128], index: 5, kind: output, shape index: {}]  }
   0x1   :  { %11 = vsyncpa [#allocation6], 0 }
   0x2   :  { %12 = vsyncpa [#allocation4], 0  ;;  %s873_s18 = smov [#allocation2]   ;;  %s801_s22 = scalar_lea.hbm %s1014_s1, 2048 }
   0x3   :  { %s20_s19 = sshll.u32 %s873_s18, 4  ;;  %p802_p0 = scmp.ne.s32.totalorder %s1014_s1, %s801_s22  ;;  %s21_s19 = int_to_ptr.vmem [resolvable:$true] %s20_s19 }
   0x4   :  { %p805_p1 = scmp.lt.u32.totalorder %s801_s22, %s1014_s1 }
   0x6   :  { %p807_p2 = pnand %p805_p1, %p802_p0 }
   0x8   :  { %810 = shalt.err (!%p807_p2)
}
   0x9   :  { %s811_s27 = scalar_lea.vmem %s21_s19, 2048  ;;  %p816_p4 = scmp.lt.s32.totalorder %s21_s19, %s21_s19 }
   0xa   :  { %p812_p3 = scmp.ne.s32.totalorder %s21_s19, %s811_s27  ;;  %p817_p5 = scmp.lt.s32.totalorder %s811_s27, %s811_s27 }
   0xc   :  { %p818_p6 = por %p817_p5, %p816_p4 }
   0xe   :  { %p819_p7 = pnand %p818_p6, %p812_p3 }
  0x10   :  { %822 = shalt.err (!%p819_p7)
}
  0x11   :  { %s874_s28 = smov 64   ;;  %s875_s29 = smov 4  }
  0x12   :  { %26 = dma.hbm_to_vmem [thread:$0]  %s1014_s1, 2048, %s21_s19, [#allocation3], %s874_s28, %s874_s28, %s875_s29  }
  0x13   :  { %s876_s7 = smov [#allocation5]   ;;  %s823_s11 = scalar_lea.hbm %s1016_s3, 1024 }
  0x14   :  { %s34_s8 = sshll.u32 %s876_s7, 4  ;;  %p824_p8 = scmp.ne.s32.totalorder %s1016_s3, %s823_s11  ;;  %s35_s8 = int_to_ptr.vmem [resolvable:$true] %s34_s8 }
  0x15   :  { %p827_p9 = scmp.lt.u32.totalorder %s823_s11, %s1016_s3 }
  0x17   :  { %p829_p10 = pnand %p827_p9, %p824_p8 }
  0x19   :  { %832 = shalt.err (!%p829_p10)
}
  0x1a   :  { %s833_s16 = scalar_lea.vmem %s35_s8, 1024  ;;  %p838_p12 = scmp.lt.s32.totalorder %s35_s8, %s35_s8 }
  0x1b   :  { %p834_p11 = scmp.ne.s32.totalorder %s35_s8, %s833_s16  ;;  %p839_p13 = scmp.lt.s32.totalorder %s833_s16, %s833_s16 }
  0x1d   :  { %p840_p0 = por %p839_p13, %p838_p12 }
  0x1f   :  { %p841_p1 = pnand %p840_p0, %p834_p11 }
  0x21   :  { %844 = shalt.err (!%p841_p1)
}
  0x22   :  { %40 = dma.hbm_to_vmem [thread:$0]  %s1016_s3, 1024, %s35_s8, [#allocation6], %s874_s28, %s874_s28, %s875_s29  }
  0x23   :  { %867 = dma.done.wait [#allocation3], 2048  }
  0x24   :  { %868 = vsyncadd [#allocation3], 4294965248 }
  0x25   :  { %869 = dma.done.wait [#allocation6], 1024  }
  0x26   :  { %870 = vsyncadd [#allocation6], 4294966272  ;;  %v877_v0 = vmov 0   ;;  %v51_v1 = vld [vmem:[%s1013_s0] sm:$0xff]  ;;  %v878_v4 = vmov 0.0   ;;  %v769_v5 = vld [vmem:[#allocation2 + $0x48] sm:$0xff]   ;;  %v52_v19 = vlaneseq }
  0x27   :  { %766 = vset.pattern.permute.xlu0 %v877_v0  ;;  %v767_v2 = vld [vmem:[#allocation2 + $0x40] sm:$0xff]   ;;  %688 = vmatprep.subr.bf16.mxu0 %v878_v4  ;;  %v770_v6 = vld [vmem:[#allocation2 + $0x8] sm:$0xff]   ;;  %v771_v7 = vld [vmem:[#allocation2 + $0x50] sm:$0xff]   ;;  %vm879_vm0 = vmmov 0   ;;  %v880_v37 = vmov 683565275  }
  0x28   :  { %60 = vperm.xlu0 %766, %v51_v1   ;;  %v768_v3 = vld [vmem:[#allocation2] sm:$0xff]   ;;  %708 = vmatprep.subr.bf16.mxu1 %v878_v4  ;;  %v772_v8 = vld [vmem:[#allocation2 + $0x10] sm:$0xff]   ;;  %v773_v9 = vld [vmem:[#allocation2 + $0x58] sm:$0xff]   ;;  %v53_v20 = vand.u32 127, %v52_v19  ;;  %v881_v39 = vmov 2475754826  }
  0x29   :  { %689 = vmatpush3.bf16.msra.mxu0 %v767_v2  ;;  %709 = vmatpush3.bf16.msra.mxu1 %v768_v3  ;;  %v774_v10 = vld [vmem:[#allocation2 + $0x18] sm:$0xff]   ;;  %v775_v11 = vld [vmem:[#allocation2 + $0x60] sm:$0xff]   ;;  %v777_v13 = vld [vmem:[#allocation2 + $0x68] sm:$0xff]   ;;  %v882_v42 = vmov 2131351028   ;;  %s886_s21 = smov [#allocation7]  }
  0x2a   :  { %690 = vmatprep.subr.bf16.mxu0 %v878_v4  ;;  %710 = vmatprep.subr.bf16.mxu1 %v878_v4  ;;  %v776_v12 = vld [vmem:[#allocation2 + $0x20] sm:$0xff]   ;;  %v778_v14 = vld [vmem:[#allocation2 + $0x28] sm:$0xff]   ;;  %v779_v15 = vld [vmem:[#allocation2 + $0x70] sm:$0xff]   ;;  %v54_v21 = vcvt.s32.f32 %v53_v20  ;;  %v883_v45 = vmov 2102212464   ;;  %s616_s22 = sshll.u32 %s886_s21, 4  ;;  %s617_s22 = int_to_ptr.vmem [resolvable:$true] %s616_s22 }
  0x2b   :  { %704 = vmatprep.mubr.msk.bf16.mxu0 %vm879_vm0, %v878_v4  ;;  %724 = vmatprep.mubr.msk.bf16.mxu1 %vm879_vm0, %v878_v4  ;;  %v780_v16 = vld [vmem:[#allocation2 + $0x30] sm:$0xff]   ;;  %v781_v17 = vld [vmem:[#allocation2 + $0x78] sm:$0xff]   ;;  %v884_v48 = vmov 920167782   ;;  %v885_v51 = vmov 1326507024   ;;  %p850_p3 = scmp.lt.s32.totalorder %s617_s22, %s617_s22 }
  0x2c   :  { %v782_v18 = vld [vmem:[#allocation2 + $0x38] sm:$0xff]   ;;  %v55_v22 = vmul.f32 -0.071955785, %v54_v21  ;;  %s845_s23 = scalar_lea.vmem %s617_s22, 128 }
  0x2d   :  { %691 = vmatpush3.bf16.msra.mxu0 %v769_v5  ;;  %711 = vmatpush3.bf16.msra.mxu1 %v770_v6  ;;  %p846_p2 = scmp.ne.s32.totalorder %s617_s22, %s845_s23  ;;  %p851_p4 = scmp.lt.s32.totalorder %s845_s23, %s845_s23 }
  0x2e   :  { %692 = vmatprep.subr.bf16.mxu0 %v878_v4  ;;  %712 = vmatprep.subr.bf16.mxu1 %v878_v4  ;;  %v56_v23 = vmul.f32 1.442695, %v55_v22 }
  0x2f   :  { %p852_p5 = por %p851_p4, %p850_p3 }
  0x30   :  { %791 = vpow2.f32 %v56_v23 }
  0x31   :  { %693 = vmatpush3.bf16.msra.mxu0 %v771_v7  ;;  %713 = vmatpush3.bf16.msra.mxu1 %v772_v8  ;;  %p853_p6 = pnand %p852_p5, %p846_p2 }
  0x32   :  { %694 = vmatprep.subr.bf16.mxu0 %v878_v4  ;;  %714 = vmatprep.subr.bf16.mxu1 %v878_v4 }
  0x35   :  { %695 = vmatpush3.bf16.msra.mxu0 %v773_v9  ;;  %715 = vmatpush3.bf16.msra.mxu1 %v774_v10 }
  0x36   :  { %696 = vmatprep.subr.bf16.mxu0 %v878_v4  ;;  %716 = vmatprep.subr.bf16.mxu1 %v878_v4 }
  0x39   :  { %697 = vmatpush3.bf16.msra.mxu0 %v775_v11  ;;  %717 = vmatpush3.bf16.msra.mxu1 %v776_v12 }
  0x3a   :  { %698 = vmatprep.subr.bf16.mxu0 %v878_v4  ;;  %718 = vmatprep.subr.bf16.mxu1 %v878_v4  ;;  %v792_v24 = vpop.eup %791 }
  0x3d   :  { %699 = vmatpush3.bf16.msra.mxu0 %v777_v13  ;;  %719 = vmatpush3.bf16.msra.mxu1 %v778_v14 }
  0x3e   :  { %700 = vmatprep.subr.bf16.mxu0 %v878_v4  ;;  %720 = vmatprep.subr.bf16.mxu1 %v878_v4 }
  0x41   :  { %701 = vmatpush3.bf16.msra.mxu0 %v779_v15  ;;  %721 = vmatpush3.bf16.msra.mxu1 %v780_v16 }
  0x42   :  { %702 = vmatprep.subr.bf16.mxu0 %v878_v4  ;;  %722 = vmatprep.subr.bf16.mxu1 %v878_v4 }
  0x45   :  { %703 = vmatpush3.bf16.msra.mxu0 %v781_v17  ;;  %723 = vmatpush3.bf16.msra.mxu1 %v782_v18 }
  0x46   :  { %728 = vmatprep.subr.bf16.mxu0 %v878_v4 }
  0xa7   :  { %v61_v25 = vpop.permute.xlu0 %60 }
  0xa8   :  { %v965_v26 = vmul.f32 %v792_v24, %v61_v25 }
  0xaa   :  { %v67_v27 = vand.u32 2139095040, %v965_v26  ;;  %v64_v31 = vand.u32 2147483647, %v965_v26  ;;  %vm66_vm8 = vcmp.lt.s32.totalorder %v965_v26, 0 }
  0xac   :  { %v68_v28 = vshrl.u32 %v67_v27, 23  ;;  %v71_v34 = vand.u32 8388607, %v64_v31  ;;  %vm65_vm9 = vcmp.le.f32.partialorder %v64_v31, 0.7853982 }
  0xae   :  { %v626_v29 = vadd.s32 4294967169, %v68_v28  ;;  %v72_v53 = vor.u32 8388608, %v71_v34 }
  0xb0   :  { %v74_v30 = vadd.s32 1, %v626_v29  ;;  %v112_v3 = vshll.u32 %v72_v53, 8 }
  0xb2   :  { %vm75_vm1 = vcmp.gt.s32.totalorder %v74_v30, 0 }
  0xb3   :  { %v76_v32 = vsel %vm75_vm1, %v74_v30, 0  ;;  %vm156_vm1 = vweird.f32 %v965_v26 }
  0xb4   :  { %v78_v33 = vand.u32 31, %v76_v32  ;;  %v77_v36 = vshrl.u32 %v76_v32, 5 }
  0xb6   :  { %v79_v35 = vsub.s32 32, %v78_v33  ;;  %v81_v38 = vshll.u32 %v880_v37, %v78_v33  ;;  %v84_v40 = vshll.u32 %v881_v39, %v78_v33  ;;  %v87_v44 = vshll.u32 %v882_v42, %v78_v33 }
  0xb7   :  { %v90_v47 = vshll.u32 %v883_v45, %v78_v33  ;;  %v93_v50 = vshll.u32 %v884_v48, %v78_v33  ;;  %vm96_vm2 = vcmp.lt.s32.totalorder %v77_v36, 1  ;;  %vm99_vm3 = vcmp.lt.s32.totalorder %v77_v36, 4 }
  0xb8   :  { %v82_v41 = vshrl.u32 %v881_v39, %v79_v35  ;;  %v85_v43 = vshrl.u32 %v882_v42, %v79_v35  ;;  %v88_v46 = vshrl.u32 %v883_v45, %v79_v35  ;;  %v91_v49 = vshrl.u32 %v884_v48, %v79_v35 }
  0xb9   :  { %v94_v52 = vshrl.u32 %v885_v51, %v79_v35  ;;  %v80_v62 = vshrl.u32 %v880_v37, %v79_v35  ;;  %vm98_vm4 = vcmp.lt.s32.totalorder %v77_v36, 3  ;;  %vm97_vm5 = vcmp.lt.s32.totalorder %v77_v36, 2 }
  0xba   :  { %v83_v54 = vor.u32 %v82_v41, %v81_v38  ;;  %v86_v55 = vor.u32 %v85_v43, %v84_v40  ;;  %v89_v56 = vor.u32 %v88_v46, %v87_v44  ;;  %v92_v57 = vor.u32 %v91_v49, %v90_v47 }
  0xbb   :  { %v95_v58 = vor.u32 %v94_v52, %v93_v50 }
  0xbc   :  { %v101_v59 = vsel %vm99_vm3, %v89_v56, 2102212464  ;;  %v104_v60 = vsel %vm96_vm2, %v83_v54, %v86_v55  ;;  %v108_v61 = vsel %vm96_vm2, %v86_v55, %v89_v56  ;;  %v105_v63 = vsel %vm99_vm3, %v92_v57, 920167782 }
  0xbd   :  { %v109_v0 = vsel %vm99_vm3, %v95_v58, 1326507024  ;;  %v106_v1 = vsel %vm98_vm4, %v89_v56, %v105_v63  ;;  %v100_v5 = vsel %vm96_vm2, %v80_v62, %v83_v54  ;;  %v102_v6 = vsel %vm98_vm4, %v86_v55, %v101_v59  ;;  %v783_v63 = vld [vmem:[#allocation5] sm:$0xff]  }
  0xbe   :  { %v110_v2 = vsel %vm98_vm4, %v92_v57, %v109_v0  ;;  %v107_v7 = vsel %vm97_vm5, %v104_v60, %v106_v1  ;;  %v103_v13 = vsel %vm97_vm5, %v100_v5, %v102_v6  ;;  %v784_v0 = vld [vmem:[#allocation5 + $0x8] sm:$0xff]   ;;  %v786_v1 = vld [vmem:[#allocation5 + $0x18] sm:$0xff]   ;;  %v789_v5 = vld [vmem:[#allocation5 + $0x30] sm:$0xff]  }
  0xbf   :  { %v111_v8 = vsel %vm97_vm5, %v108_v61, %v110_v2  ;;  %v974_v11 = vmul.u32.u64.low %v112_v3, %v107_v7  ;;  %v975_v12 = vmul.u32.u64.high %v112_v3, %v107_v7, %v974_v11  ;;  %v119_v15 = vmul.u32 %v112_v3, %v103_v13  ;;  %v787_v2 = vld [vmem:[#allocation5 + $0x20] sm:$0xff]   ;;  %v790_v6 = vld [vmem:[#allocation5 + $0x38] sm:$0xff]  }
  0xc0   :  { %v971_v9 = vmul.u32.u64.low %v112_v3, %v111_v8  ;;  %v972_v10 = vmul.u32.u64.high %v112_v3, %v111_v8, %v971_v9  ;;  %v788_v3 = vld [vmem:[#allocation5 + $0x28] sm:$0xff]  }
  0xc1   :  { %v122_v14 = vadd.s32 1, %v975_v12  ;;  %v650_v9 = vld [vmem:[%s1015_s2] ss:$0 sm:$0xff] }
  0xc2   :  { %vm121_vm6 = vc.u32 %v972_v10, %v974_v11  ;;  %v120_v28 = vadd.s32 %v974_v11, %v972_v10 }
  0xc3   :  { %v123_v16 = vsel %vm121_vm6, %v122_v14, %v975_v12 }
  0xc4   :  { %v124_v17 = vadd.s32 %v123_v16, %v119_v15 }
  0xc6   :  { %v125_v18 = vadd.s32 536870912, %v124_v17 }
  0xc8   :  { %v126_v19 = vshrl.u32 %v125_v18, 30 }
  0xca   :  { %v127_v20 = vshll.u32 %v126_v19, 30  ;;  %v150_v41 = vsub.s32 4, %v126_v19 }
  0xcc   :  { %v128_v21 = vsub.s32 %v124_v17, %v127_v20  ;;  %v151_v44 = vsel %vm66_vm8, %v150_v41, %v126_v19 }
  0xcd   :  { %v153_v46 = vsel %vm65_vm9, 0, %v151_v44 }
  0xce   :  { %v130_v22 = vsub.s32 0, %v128_v21  ;;  %v261_v47 = vadd.s32 3, %v153_v46  ;;  %v157_v49 = vand.u32 3, %v153_v46 }
  0xd0   :  { %v627_v23 = vmin.u32 %v130_v22, %v128_v21  ;;  %v262_v48 = vand.u32 3, %v261_v47  ;;  %vm162_vm11 = vcmp.eq.s32.totalorder %v157_v49, 2  ;;  %vm159_vm13 = vcmp.eq.s32.totalorder %v157_v49, 0 }
  0xd1   :  { %vm158_vm15 = vcmp.lt.s32.totalorder %v157_v49, 2 }
  0xd2   :  { %v132_v24 = vclz %v627_v23  ;;  %vm267_vm10 = vcmp.eq.s32.totalorder %v262_v48, 2  ;;  %vm264_vm12 = vcmp.eq.s32.totalorder %v262_v48, 0  ;;  %vm263_vm14 = vcmp.lt.s32.totalorder %v262_v48, 2 }
  0xd4   :  { %v628_v25 = vadd.s32 4294967294, %v132_v24  ;;  %v652_v24 = vld [vmem:[%s1017_s4] ss:$0 sm:$0xff] }
  0xd6   :  { %vm629_vm7 = vcmp.lt.s32.totalorder %v628_v25, 0 }
  0xd7   :  { %v135_v27 = vsel %vm629_vm7, 0, %v628_v25 }
  0xd8   :  { %v136_v29 = vsub.s32 32, %v135_v27  ;;  %v140_v30 = vsub.s32 4294967266, %v135_v27  ;;  %v137_v32 = vshll.u32 %v128_v21, %v135_v27 }
  0xda   :  { %v138_v33 = vshrl.u32 %v120_v28, %v136_v29  ;;  %v141_v34 = vadd.s32 127, %v140_v30 }
  0xdc   :  { %v139_v35 = vor.u32 %v138_v33, %v137_v32  ;;  %v142_v36 = vshll.u32 %v141_v34, 23 }
  0xde   :  { %v143_v37 = vor.u32 4788187, %v142_v36  ;;  %v146_v39 = vcvt.s32.f32 %v139_v35 }
  0xe0   :  { %v144_v38 = vand.u32 2147483647, %v143_v37 }
  0xe2   :  { %v147_v40 = vmul.f32 %v146_v39, %v144_v38 }
  0xe4   :  { %v148_v42 = vxor.u32 2147483648, %v147_v40 }
  0xe6   :  { %v149_v43 = vsel %vm66_vm8, %v148_v42, %v147_v40 }
  0xe7   :  { %v152_v45 = vsel %vm65_vm9, %v965_v26, %v149_v43  ;;  %v785_v26 = vld [vmem:[#allocation5 + $0x10] sm:$0xff]  }
  0xe8   :  { %793 = vcosq.f32 %v152_v45 }
  0xe9   :  { %795 = vsinq.f32 %v152_v45 }
  0xf2   :  { %v794_v50 = vpop.eup %793 }
  0xf3   :  { %v796_v51 = vpop.eup %795  ;;  %v163_v52 = vxor.u32 2147483648, %v794_v50 }
  0xf4   :  { %v160_v53 = vxor.u32 2147483648, %v796_v51 }
  0xf5   :  { %v269_v54 = vsel %vm267_vm10, %v163_v52, %v796_v51  ;;  %v164_v31 = vsel %vm162_vm11, %v163_v52, %v796_v51 }
  0xf6   :  { %v266_v55 = vsel %vm264_vm12, %v794_v50, %v160_v53  ;;  %v161_v56 = vsel %vm159_vm13, %v794_v50, %v160_v53 }
  0xf7   :  { %v270_v57 = vsel %vm263_vm14, %v266_v55, %v269_v54  ;;  %v165_v58 = vsel %vm158_vm15, %v161_v56, %v164_v31 }
  0xf8   :  { %v271_v59 = vsel %vm156_vm1, nan, %v270_v57  ;;  %v166_v60 = vsel %vm156_vm1, nan, %v165_v58 }
  0xf9   :  { %v272_v61 = vpack.c.bf16 %v271_v59, %v271_v59  ;;  %v167_v62 = vpack.c.bf16 %v166_v60, %v166_v60 }
  0xfb   :  { %705 = vmatmul.mubr.bf16.vlgmr.msra.gmra.mrb[0].mxu0 %v272_v61  ;;  %725 = vmatmul.mubr.bf16.vlgmr.msra.gmra.mrb[0].mxu1 %v167_v62 }
  0xfc   :  { %744 = vmatprep.mubr.msk.bf16.mxu0 %vm879_vm0, %v878_v4  ;;  %729 = vmatpush3.bf16.msra.mxu0 %v783_v63 }
  0xfd   :  { %730 = vmatprep.subr.bf16.mxu0 %v878_v4 }
 0x100   :  { %731 = vmatpush3.bf16.msra.mxu0 %v784_v0 }
 0x101   :  { %732 = vmatprep.subr.bf16.mxu0 %v878_v4 }
 0x104   :  { %733 = vmatpush3.bf16.msra.mxu0 %v785_v26 }
 0x105   :  { %734 = vmatprep.subr.bf16.mxu0 %v878_v4 }
 0x108   :  { %735 = vmatpush3.bf16.msra.mxu0 %v786_v1 }
 0x109   :  { %736 = vmatprep.subr.bf16.mxu0 %v878_v4 }
 0x10c   :  { %737 = vmatpush3.bf16.msra.mxu0 %v787_v2 }
 0x10d   :  { %738 = vmatprep.subr.bf16.mxu0 %v878_v4 }
 0x110   :  { %739 = vmatpush3.bf16.msra.mxu0 %v788_v3 }
 0x111   :  { %740 = vmatprep.subr.bf16.mxu0 %v878_v4 }
 0x114   :  { %741 = vmatpush3.bf16.msra.mxu0 %v789_v5 }
 0x115   :  { %742 = vmatprep.subr.bf16.mxu0 %v878_v4 }
 0x118   :  { %743 = vmatpush3.bf16.msra.mxu0 %v790_v6 }
 0x1ce   :  { %v387_v7 = vpop.f32.mrb[0].mxu0  ;;  %v475_v8 = vpop.f32.mrb[0].mxu1 }
 0x1cf   :  { %v476_v10 = vadd.f32 %v475_v8, %v387_v7  ;;  %v706_v11 = vpop.f32.mrb[1].mxu0  ;;  %v726_v12 = vpop.f32.mrb[1].mxu1 }
 0x1d0   :  { %v390_v13 = vpop.f32.mrb[2].mxu0  ;;  %v478_v14 = vpop.f32.mrb[2].mxu1 }
 0x1d1   :  { %v488_v15 = vadd.f32 %v650_v9, %v476_v10  ;;  %v707_v16 = vpop.f32.mrb[3].mxu0  ;;  %v727_v17 = vpop.f32.mrb[3].mxu1 }
 0x1d3   :  { %v489_v18 = vpack.c.bf16 %v488_v15, %v488_v15 }
 0x1d5   :  { %v651_v19 = vmul.bf16 3216621497, %v489_v18 }
 0x1d7   :  { %797 = vpow.bf16 %v651_v19 }
 0x1e2   :  { %v798_v4 = vpop.eup %797 }
 0x1e3   :  { %v494_v20 = vadd.bf16 1065369472, %v798_v4 }
 0x1e5   :  { %799 = vrcp.bf16 %v494_v20 }
 0x1f0   :  { %v800_v21 = vpop.eup %799 }
 0x1f1   :  { %v496_v22 = vmul.bf16 1065369472, %v800_v21 }
 0x1f3   :  { %v497_v23 = vmul.bf16 %v496_v22, %v489_v18 }
 0x1f5   :  { %745 = vmatmul.mubr.bf16.vlgmr.msra.gmra.mrb[4].mxu0 %v497_v23 }
 0x2c8   :  { %v603_v25 = vpop.f32.mrb[4].mxu0 }
 0x2c9   :  { %v604_v27 = vadd.f32 %v652_v24, %v603_v25  ;;  %v746_v28 = vpop.f32.mrb[5].mxu0 }
 0x2ca   :  { %v606_v29 = vpop.f32.mrb[6].mxu0 }
 0x2cb   :  { %609 = vst [vmem:[#allocation7] sm:$0xff] %v604_v27  ;;  %v747_v30 = vpop.f32.mrb[7].mxu0 }
 0x2cc   :  { %856 = shalt.err (!%p853_p6)
}
 0x2cd   :  { %s857_s4 = scalar_lea.hbm %s1018_s5, 128 }
 0x2ce   :  { %p858_p7 = scmp.ne.s32.totalorder %s1018_s5, %s857_s4  ;;  %p861_p8 = scmp.lt.u32.totalorder %s857_s4, %s1018_s5 }
 0x2d0   :  { %p863_p9 = pnand %p861_p8, %p858_p7 }
 0x2d2   :  { %866 = shalt.err (!%p863_p9)
}
 0x2d3   :  { %619 = dma.vmem_to_hbm [thread:$0]  %s617_s22, 128, %s1018_s5, [#allocation4]  }
 0x2d4   :  { %871 = dma.done.wait [#allocation4], 128  }
 0x2d5   :  { %872 = vsyncadd [#allocation4], 4294967168 }
 0x2d6   :  { %623 = vsyncpa [#allocation3], 1 }
 0x2d7   :  { %624 = vsyncpa [#allocation6], 1 }
 0x2d8   :  { %625 = vsyncpa [#allocation4], 1 }

// kernel: tpu_custom_call.1
= control target key start
LH: loop header
LB: loop body
LE: loop exit
PB: predicated region body
PF: predicated region fallthrough
CT: control target
= control target key end

     0   :  { %10 = vsyncpa [#allocation3], 0  ;;  %s1013_s0 = inlined_call_operand.vmem [shape: f32[8,1], index: 0, kind: input, shape index: {}]   ;;  %s1014_s1 = inlined_call_operand.hbm [shape: bf16[256,128], index: 1, kind: input, shape index: {}]   ;;  %s1015_s2 = inlined_call_operand.vmem [shape: f32[1,128], index: 2, kind: input, shape index: {}]   ;;  %s1016_s3 = inlined_call_operand.hbm [shape: bf16[128,128], index: 3, kind: input, shape index: {}]   ;;  %s1017_s4 = inlined_call_operand.vmem [shape: f32[1,128], index: 4, kind: input, shape index: {}]   ;;  %s1018_s5 = inlined_call_operand.hbm [shape: f32[8,128], index: 5, kind: output, shape index: {}]  }
   0x1   :  { %11 = vsyncpa [#allocation6], 0 }
   0x2   :  { %12 = vsyncpa [#allocation4], 0  ;;  %s873_s18 = smov [#allocation2]   ;;  %s801_s22 = scalar_lea.hbm %s1014_s1, 2048 }
   0x3   :  { %s20_s19 = sshll.u32 %s873_s18, 4  ;;  %p802_p0 = scmp.ne.s32.totalorder %s1014_s1, %s801_s22  ;;  %s21_s19 = int_to_ptr.vmem [resolvable:$true] %s20_s19 }
   0x4   :  { %p805_p1 = scmp.lt.u32.totalorder %s801_s22, %s1014_s1 }
   0x6   :  { %p807_p2 = pnand %p805_p1, %p802_p0 }
   0x8   :  { %810 = shalt.err (!%p807_p2)
}
   0x9   :  { %s811_s27 = scalar_lea.vmem %s21_s19, 2048  ;;  %p816_p4 = scmp.lt.s32.totalorder %s21_s19, %s21_s19 }
   0xa   :  { %p812_p3 = scmp.ne.s32.totalorder %s21_s19, %s811_s27  ;;  %p817_p5 = scmp.lt.s32.totalorder %s811_s27, %s811_s27 }
   0xc   :  { %p818_p6 = por %p817_p5, %p816_p4 }
   0xe   :  { %p819_p7 = pnand %p818_p6, %p812_p3 }
  0x10   :  { %822 = shalt.err (!%p819_p7)
}
  0x11   :  { %s874_s28 = smov 64   ;;  %s875_s29 = smov 4  }
  0x12   :  { %26 = dma.hbm_to_vmem [thread:$0]  %s1014_s1, 2048, %s21_s19, [#allocation3], %s874_s28, %s874_s28, %s875_s29  }
  0x13   :  { %s876_s7 = smov [#allocation5]   ;;  %s823_s11 = scalar_lea.hbm %s1016_s3, 1024 }
  0x14   :  { %s34_s8 = sshll.u32 %s876_s7, 4  ;;  %p824_p8 = scmp.ne.s32.totalorder %s1016_s3, %s823_s11  ;;  %s35_s8 = int_to_ptr.vmem [resolvable:$true] %s34_s8 }
  0x15   :  { %p827_p9 = scmp.lt.u32.totalorder %s823_s11, %s1016_s3 }
  0x17   :  { %p829_p10 = pnand %p827_p9, %p824_p8 }
  0x19   :  { %832 = shalt.err (!%p829_p10)
}
  0x1a   :  { %s833_s16 = scalar_lea.vmem %s35_s8, 1024  ;;  %p838_p12 = scmp.lt.s32.totalorder %s35_s8, %s35_s8 }
  0x1b   :  { %p834_p11 = scmp.ne.s32.totalorder %s35_s8, %s833_s16  ;;  %p839_p13 = scmp.lt.s32.totalorder %s833_s16, %s833_s16 }
  0x1d   :  { %p840_p0 = por %p839_p13, %p838_p12 }
  0x1f   :  { %p841_p1 = pnand %p840_p0, %p834_p11 }
  0x21   :  { %844 = shalt.err (!%p841_p1)
}
  0x22   :  { %40 = dma.hbm_to_vmem [thread:$0]  %s1016_s3, 1024, %s35_s8, [#allocation6], %s874_s28, %s874_s28, %s875_s29  }
  0x23   :  { %867 = dma.done.wait [#allocation3], 2048  }
  0x24   :  { %868 = vsyncadd [#allocation3], 4294965248 }
  0x25   :  { %869 = dma.done.wait [#allocation6], 1024  }
  0x26   :  { %870 = vsyncadd [#allocation6], 4294966272  ;;  %v877_v0 = vmov 0   ;;  %v51_v1 = vld [vmem:[%s1013_s0] sm:$0xff]  ;;  %v878_v4 = vmov 0.0   ;;  %v769_v5 = vld [vmem:[#allocation2 + $0x48] sm:$0xff]   ;;  %v52_v19 = vlaneseq }
  0x27   :  { %766 = vset.pattern.permute.xlu0 %v877_v0  ;;  %v767_v2 = vld [vmem:[#allocation2 + $0x40] sm:$0xff]   ;;  %688 = vmatprep.subr.bf16.mxu0 %v878_v4  ;;  %v770_v6 = vld [vmem:[#allocation2 + $0x8] sm:$0xff]   ;;  %v771_v7 = vld [vmem:[#allocation2 + $0x50] sm:$0xff]   ;;  %vm879_vm0 = vmmov 0   ;;  %v880_v37 = vmov 683565275  }
  0x28   :  { %60 = vperm.xlu0 %766, %v51_v1   ;;  %v768_v3 = vld [vmem:[#allocation2] sm:$0xff]   ;;  %708 = vmatprep.subr.bf16.mxu1 %v878_v4  ;;  %v772_v8 = vld [vmem:[#allocation2 + $0x10] sm:$0xff]   ;;  %v773_v9 = vld [vmem:[#allocation2 + $0x58] sm:$0xff]   ;;  %v53_v20 = vand.u32 127, %v52_v19  ;;  %v881_v39 = vmov 2475754826  }
  0x29   :  { %689 = vmatpush3.bf16.msra.mxu0 %v767_v2  ;;  %709 = vmatpush3.bf16.msra.mxu1 %v768_v3  ;;  %v774_v10 = vld [vmem:[#allocation2 + $0x18] sm:$0xff]   ;;  %v775_v11 = vld [vmem:[#allocation2 + $0x60] sm:$0xff]   ;;  %v777_v13 = vld [vmem:[#allocation2 + $0x68] sm:$0xff]   ;;  %v882_v42 = vmov 2131351028   ;;  %s886_s21 = smov [#allocation7]  }
  0x2a   :  { %690 = vmatprep.subr.bf16.mxu0 %v878_v4  ;;  %710 = vmatprep.subr.bf16.mxu1 %v878_v4  ;;  %v776_v12 = vld [vmem:[#allocation2 + $0x20] sm:$0xff]   ;;  %v778_v14 = vld [vmem:[#allocation2 + $0x28] sm:$0xff]   ;;  %v779_v15 = vld [vmem:[#allocation2 + $0x70] sm:$0xff]   ;;  %v54_v21 = vcvt.s32.f32 %v53_v20  ;;  %v883_v45 = vmov 2102212464   ;;  %s616_s22 = sshll.u32 %s886_s21, 4  ;;  %s617_s22 = int_to_ptr.vmem [resolvable:$true] %s616_s22 }
  0x2b   :  { %704 = vmatprep.mubr.msk.bf16.mxu0 %vm879_vm0, %v878_v4  ;;  %724 = vmatprep.mubr.msk.bf16.mxu1 %vm879_vm0, %v878_v4  ;;  %v780_v16 = vld [vmem:[#allocation2 + $0x30] sm:$0xff]   ;;  %v781_v17 = vld [vmem:[#allocation2 + $0x78] sm:$0xff]   ;;  %v884_v48 = vmov 920167782   ;;  %v885_v51 = vmov 1326507024   ;;  %p850_p3 = scmp.lt.s32.totalorder %s617_s22, %s617_s22 }
  0x2c   :  { %v782_v18 = vld [vmem:[#allocation2 + $0x38] sm:$0xff]   ;;  %v55_v22 = vmul.f32 -0.071955785, %v54_v21  ;;  %s845_s23 = scalar_lea.vmem %s617_s22, 128 }
  0x2d   :  { %691 = vmatpush3.bf16.msra.mxu0 %v769_v5  ;;  %711 = vmatpush3.bf16.msra.mxu1 %v770_v6  ;;  %p846_p2 = scmp.ne.s32.totalorder %s617_s22, %s845_s23  ;;  %p851_p4 = scmp.lt.s32.totalorder %s845_s23, %s845_s23 }
  0x2e   :  { %692 = vmatprep.subr.bf16.mxu0 %v878_v4  ;;  %712 = vmatprep.subr.bf16.mxu1 %v878_v4  ;;  %v56_v23 = vmul.f32 1.442695, %v55_v22 }
  0x2f   :  { %p852_p5 = por %p851_p4, %p850_p3 }
  0x30   :  { %791 = vpow2.f32 %v56_v23 }
  0x31   :  { %693 = vmatpush3.bf16.msra.mxu0 %v771_v7  ;;  %713 = vmatpush3.bf16.msra.mxu1 %v772_v8  ;;  %p853_p6 = pnand %p852_p5, %p846_p2 }
  0x32   :  { %694 = vmatprep.subr.bf16.mxu0 %v878_v4  ;;  %714 = vmatprep.subr.bf16.mxu1 %v878_v4 }
  0x35   :  { %695 = vmatpush3.bf16.msra.mxu0 %v773_v9  ;;  %715 = vmatpush3.bf16.msra.mxu1 %v774_v10 }
  0x36   :  { %696 = vmatprep.subr.bf16.mxu0 %v878_v4  ;;  %716 = vmatprep.subr.bf16.mxu1 %v878_v4 }
  0x39   :  { %697 = vmatpush3.bf16.msra.mxu0 %v775_v11  ;;  %717 = vmatpush3.bf16.msra.mxu1 %v776_v12 }
  0x3a   :  { %698 = vmatprep.subr.bf16.mxu0 %v878_v4  ;;  %718 = vmatprep.subr.bf16.mxu1 %v878_v4  ;;  %v792_v24 = vpop.eup %791 }
  0x3d   :  { %699 = vmatpush3.bf16.msra.mxu0 %v777_v13  ;;  %719 = vmatpush3.bf16.msra.mxu1 %v778_v14 }
  0x3e   :  { %700 = vmatprep.subr.bf16.mxu0 %v878_v4  ;;  %720 = vmatprep.subr.bf16.mxu1 %v878_v4 }
  0x41   :  { %701 = vmatpush3.bf16.msra.mxu0 %v779_v15  ;;  %721 = vmatpush3.bf16.msra.mxu1 %v780_v16 }
  0x42   :  { %702 = vmatprep.subr.bf16.mxu0 %v878_v4  ;;  %722 = vmatprep.subr.bf16.mxu1 %v878_v4 }
  0x45   :  { %703 = vmatpush3.bf16.msra.mxu0 %v781_v17  ;;  %723 = vmatpush3.bf16.msra.mxu1 %v782_v18 }
  0x46   :  { %728 = vmatprep.subr.bf16.mxu0 %v878_v4 }
  0xa7   :  { %v61_v25 = vpop.permute.xlu0 %60 }
  0xa8   :  { %v965_v26 = vmul.f32 %v792_v24, %v61_v25 }
  0xaa   :  { %v67_v27 = vand.u32 2139095040, %v965_v26  ;;  %v64_v31 = vand.u32 2147483647, %v965_v26  ;;  %vm66_vm8 = vcmp.lt.s32.totalorder %v965_v26, 0 }
  0xac   :  { %v68_v28 = vshrl.u32 %v67_v27, 23  ;;  %v71_v34 = vand.u32 8388607, %v64_v31  ;;  %vm65_vm9 = vcmp.le.f32.partialorder %v64_v31, 0.7853982 }
  0xae   :  { %v626_v29 = vadd.s32 4294967169, %v68_v28  ;;  %v72_v53 = vor.u32 8388608, %v71_v34 }
  0xb0   :  { %v74_v30 = vadd.s32 1, %v626_v29  ;;  %v112_v3 = vshll.u32 %v72_v53, 8 }
  0xb2   :  { %vm75_vm1 = vcmp.gt.s32.totalorder %v74_v30, 0 }
  0xb3   :  { %v76_v32 = vsel %vm75_vm1, %v74_v30, 0  ;;  %vm156_vm1 = vweird.f32 %v965_v26 }
  0xb4   :  { %v78_v33 = vand.u32 31, %v76_v32  ;;  %v77_v36 = vshrl.u32 %v76_v32, 5 }
  0xb6   :  { %v79_v35 = vsub.s32 32, %v78_v33  ;;  %v81_v38 = vshll.u32 %v880_v37, %v78_v33  ;;  %v84_v40 = vshll.u32 %v881_v39, %v78_v33  ;;  %v87_v44 = vshll.u32 %v882_v42, %v78_v33 }
  0xb7   :  { %v90_v47 = vshll.u32 %v883_v45, %v78_v33  ;;  %v93_v50 = vshll.u32 %v884_v48, %v78_v33  ;;  %vm96_vm2 = vcmp.lt.s32.totalorder %v77_v36, 1  ;;  %vm99_vm3 = vcmp.lt.s32.totalorder %v77_v36, 4 }
  0xb8   :  { %v82_v41 = vshrl.u32 %v881_v39, %v79_v35  ;;  %v85_v43 = vshrl.u32 %v882_v42, %v79_v35  ;;  %v88_v46 = vshrl.u32 %v883_v45, %v79_v35  ;;  %v91_v49 = vshrl.u32 %v884_v48, %v79_v35 }
  0xb9   :  { %v94_v52 = vshrl.u32 %v885_v51, %v79_v35  ;;  %v80_v62 = vshrl.u32 %v880_v37, %v79_v35  ;;  %vm98_vm4 = vcmp.lt.s32.totalorder %v77_v36, 3  ;;  %vm97_vm5 = vcmp.lt.s32.totalorder %v77_v36, 2 }
  0xba   :  { %v83_v54 = vor.u32 %v82_v41, %v81_v38  ;;  %v86_v55 = vor.u32 %v85_v43, %v84_v40  ;;  %v89_v56 = vor.u32 %v88_v46, %v87_v44  ;;  %v92_v57 = vor.u32 %v91_v49, %v90_v47 }
  0xbb   :  { %v95_v58 = vor.u32 %v94_v52, %v93_v50 }
  0xbc   :  { %v101_v59 = vsel %vm99_vm3, %v89_v56, 2102212464  ;;  %v104_v60 = vsel %vm96_vm2, %v83_v54, %v86_v55  ;;  %v108_v61 = vsel %vm96_vm2, %v86_v55, %v89_v56  ;;  %v105_v63 = vsel %vm99_vm3, %v92_v57, 920167782 }
  0xbd   :  { %v109_v0 = vsel %vm99_vm3, %v95_v58, 1326507024  ;;  %v106_v1 = vsel %vm98_vm4, %v89_v56, %v105_v63  ;;  %v100_v5 = vsel %vm96_vm2, %v80_v62, %v83_v54  ;;  %v102_v6 = vsel %vm98_vm4, %v86_v55, %v101_v59  ;;  %v783_v63 = vld [vmem:[#allocation5] sm:$0xff]  }
  0xbe   :  { %v110_v2 = vsel %vm98_vm4, %v92_v57, %v109_v0  ;;  %v107_v7 = vsel %vm97_vm5, %v104_v60, %v106_v1  ;;  %v103_v13 = vsel %vm97_vm5, %v100_v5, %v102_v6  ;;  %v784_v0 = vld [vmem:[#allocation5 + $0x8] sm:$0xff]   ;;  %v786_v1 = vld [vmem:[#allocation5 + $0x18] sm:$0xff]   ;;  %v789_v5 = vld [vmem:[#allocation5 + $0x30] sm:$0xff]  }
  0xbf   :  { %v111_v8 = vsel %vm97_vm5, %v108_v61, %v110_v2  ;;  %v974_v11 = vmul.u32.u64.low %v112_v3, %v107_v7  ;;  %v975_v12 = vmul.u32.u64.high %v112_v3, %v107_v7, %v974_v11  ;;  %v119_v15 = vmul.u32 %v112_v3, %v103_v13  ;;  %v787_v2 = vld [vmem:[#allocation5 + $0x20] sm:$0xff]   ;;  %v790_v6 = vld [vmem:[#allocation5 + $0x38] sm:$0xff]  }
  0xc0   :  { %v971_v9 = vmul.u32.u64.low %v112_v3, %v111_v8  ;;  %v972_v10 = vmul.u32.u64.high %v112_v3, %v111_v8, %v971_v9  ;;  %v788_v3 = vld [vmem:[#allocation5 + $0x28] sm:$0xff]  }
  0xc1   :  { %v122_v14 = vadd.s32 1, %v975_v12  ;;  %v650_v9 = vld [vmem:[%s1015_s2] ss:$0 sm:$0xff] }
  0xc2   :  { %vm121_vm6 = vc.u32 %v972_v10, %v974_v11  ;;  %v120_v28 = vadd.s32 %v974_v11, %v972_v10 }
  0xc3   :  { %v123_v16 = vsel %vm121_vm6, %v122_v14, %v975_v12 }
  0xc4   :  { %v124_v17 = vadd.s32 %v123_v16, %v119_v15 }
  0xc6   :  { %v125_v18 = vadd.s32 536870912, %v124_v17 }
  0xc8   :  { %v126_v19 = vshrl.u32 %v125_v18, 30 }
  0xca   :  { %v127_v20 = vshll.u32 %v126_v19, 30  ;;  %v150_v41 = vsub.s32 4, %v126_v19 }
  0xcc   :  { %v128_v21 = vsub.s32 %v124_v17, %v127_v20  ;;  %v151_v44 = vsel %vm66_vm8, %v150_v41, %v126_v19 }
  0xcd   :  { %v153_v46 = vsel %vm65_vm9, 0, %v151_v44 }
  0xce   :  { %v130_v22 = vsub.s32 0, %v128_v21  ;;  %v261_v47 = vadd.s32 3, %v153_v46  ;;  %v157_v49 = vand.u32 3, %v153_v46 }
  0xd0   :  { %v627_v23 = vmin.u32 %v130_v22, %v128_v21  ;;  %v262_v48 = vand.u32 3, %v261_v47  ;;  %vm162_vm11 = vcmp.eq.s32.totalorder %v157_v49, 2  ;;  %vm159_vm13 = vcmp.eq.s32.totalorder %v157_v49, 0 }
  0xd1   :  { %vm158_vm15 = vcmp.lt.s32.totalorder %v157_v49, 2 }
  0xd2   :  { %v132_v24 = vclz %v627_v23  ;;  %vm267_vm10 = vcmp.eq.s32.totalorder %v262_v48, 2  ;;  %vm264_vm12 = vcmp.eq.s32.totalorder %v262_v48, 0  ;;  %vm263_vm14 = vcmp.lt.s32.totalorder %v262_v48, 2 }
  0xd4   :  { %v628_v25 = vadd.s32 4294967294, %v132_v24  ;;  %v652_v24 = vld [vmem:[%s1017_s4] ss:$0 sm:$0xff] }
  0xd6   :  { %vm629_vm7 = vcmp.lt.s32.totalorder %v628_v25, 0 }
  0xd7   :  { %v135_v27 = vsel %vm629_vm7, 0, %v628_v25 }
  0xd8   :  { %v136_v29 = vsub.s32 32, %v135_v27  ;;  %v140_v30 = vsub.s32 4294967266, %v135_v27  ;;  %v137_v32 = vshll.u32 %v128_v21, %v135_v27 }
  0xda   :  { %v138_v33 = vshrl.u32 %v120_v28, %v136_v29  ;;  %v141_v34 = vadd.s32 127, %v140_v30 }
  0xdc   :  { %v139_v35 = vor.u32 %v138_v33, %v137_v32  ;;  %v142_v36 = vshll.u32 %v141_v34, 23 }
  0xde   :  { %v143_v37 = vor.u32 4788187, %v142_v36  ;;  %v146_v39 = vcvt.s32.f32 %v139_v35 }
  0xe0   :  { %v144_v38 = vand.u32 2147483647, %v143_v37 }
  0xe2   :  { %v147_v40 = vmul.f32 %v146_v39, %v144_v38 }
  0xe4   :  { %v148_v42 = vxor.u32 2147483648, %v147_v40 }
  0xe6   :  { %v149_v43 = vsel %vm66_vm8, %v148_v42, %v147_v40 }
  0xe7   :  { %v152_v45 = vsel %vm65_vm9, %v965_v26, %v149_v43  ;;  %v785_v26 = vld [vmem:[#allocation5 + $0x10] sm:$0xff]  }
  0xe8   :  { %793 = vcosq.f32 %v152_v45 }
  0xe9   :  { %795 = vsinq.f32 %v152_v45 }
  0xf2   :  { %v794_v50 = vpop.eup %793 }
  0xf3   :  { %v796_v51 = vpop.eup %795  ;;  %v163_v52 = vxor.u32 2147483648, %v794_v50 }
  0xf4   :  { %v160_v53 = vxor.u32 2147483648, %v796_v51 }
  0xf5   :  { %v269_v54 = vsel %vm267_vm10, %v163_v52, %v796_v51  ;;  %v164_v31 = vsel %vm162_vm11, %v163_v52, %v796_v51 }
  0xf6   :  { %v266_v55 = vsel %vm264_vm12, %v794_v50, %v160_v53  ;;  %v161_v56 = vsel %vm159_vm13, %v794_v50, %v160_v53 }
  0xf7   :  { %v270_v57 = vsel %vm263_vm14, %v266_v55, %v269_v54  ;;  %v165_v58 = vsel %vm158_vm15, %v161_v56, %v164_v31 }
  0xf8   :  { %v271_v59 = vsel %vm156_vm1, nan, %v270_v57  ;;  %v166_v60 = vsel %vm156_vm1, nan, %v165_v58 }
  0xf9   :  { %v272_v61 = vpack.c.bf16 %v271_v59, %v271_v59  ;;  %v167_v62 = vpack.c.bf16 %v166_v60, %v166_v60 }
  0xfb   :  { %705 = vmatmul.mubr.bf16.vlgmr.msra.gmra.mrb[0].mxu0 %v272_v61  ;;  %725 = vmatmul.mubr.bf16.vlgmr.msra.gmra.mrb[0].mxu1 %v167_v62 }
  0xfc   :  { %744 = vmatprep.mubr.msk.bf16.mxu0 %vm879_vm0, %v878_v4  ;;  %729 = vmatpush3.bf16.msra.mxu0 %v783_v63 }
  0xfd   :  { %730 = vmatprep.subr.bf16.mxu0 %v878_v4 }
 0x100   :  { %731 = vmatpush3.bf16.msra.mxu0 %v784_v0 }
 0x101   :  { %732 = vmatprep.subr.bf16.mxu0 %v878_v4 }
 0x104   :  { %733 = vmatpush3.bf16.msra.mxu0 %v785_v26 }
 0x105   :  { %734 = vmatprep.subr.bf16.mxu0 %v878_v4 }
 0x108   :  { %735 = vmatpush3.bf16.msra.mxu0 %v786_v1 }
 0x109   :  { %736 = vmatprep.subr.bf16.mxu0 %v878_v4 }
 0x10c   :  { %737 = vmatpush3.bf16.msra.mxu0 %v787_v2 }
 0x10d   :  { %738 = vmatprep.subr.bf16.mxu0 %v878_v4 }
 0x110   :  { %739 = vmatpush3.bf16.msra.mxu0 %v788_v3 }
 0x111   :  { %740 = vmatprep.subr.bf16.mxu0 %v878_v4 }
 0x114   :  { %741 = vmatpush3.bf16.msra.mxu0 %v789_v5 }
 0x115   :  { %742 = vmatprep.subr.bf16.mxu0 %v878_v4 }
 0x118   :  { %743 = vmatpush3.bf16.msra.mxu0 %v790_v6 }
 0x1ce   :  { %v387_v7 = vpop.f32.mrb[0].mxu0  ;;  %v475_v8 = vpop.f32.mrb[0].mxu1 }
 0x1cf   :  { %v476_v10 = vadd.f32 %v475_v8, %v387_v7  ;;  %v706_v11 = vpop.f32.mrb[1].mxu0  ;;  %v726_v12 = vpop.f32.mrb[1].mxu1 }
 0x1d0   :  { %v390_v13 = vpop.f32.mrb[2].mxu0  ;;  %v478_v14 = vpop.f32.mrb[2].mxu1 }
 0x1d1   :  { %v488_v15 = vadd.f32 %v650_v9, %v476_v10  ;;  %v707_v16 = vpop.f32.mrb[3].mxu0  ;;  %v727_v17 = vpop.f32.mrb[3].mxu1 }
 0x1d3   :  { %v489_v18 = vpack.c.bf16 %v488_v15, %v488_v15 }
 0x1d5   :  { %v651_v19 = vmul.bf16 3216621497, %v489_v18 }
 0x1d7   :  { %797 = vpow.bf16 %v651_v19 }
 0x1e2   :  { %v798_v4 = vpop.eup %797 }
 0x1e3   :  { %v494_v20 = vadd.bf16 1065369472, %v798_v4 }
 0x1e5   :  { %799 = vrcp.bf16 %v494_v20 }
 0x1f0   :  { %v800_v21 = vpop.eup %799 }
 0x1f1   :  { %v496_v22 = vmul.bf16 1065369472, %v800_v21 }
 0x1f3   :  { %v497_v23 = vmul.bf16 %v496_v22, %v489_v18 }
 0x1f5   :  { %745 = vmatmul.mubr.bf16.vlgmr.msra.gmra.mrb[4].mxu0 %v497_v23 }
 0x2c8   :  { %v603_v25 = vpop.f32.mrb[4].mxu0 }
 0x2c9   :  { %v604_v27 = vadd.f32 %v652_v24, %v603_v25  ;;  %v746_v28 = vpop.f32.mrb[5].mxu0 }
 0x2ca   :  { %v606_v29 = vpop.f32.mrb[6].mxu0 }
 0x2cb   :  { %609 = vst [vmem:[#allocation7] sm:$0xff] %v604_v27  ;;  %v747_v30 = vpop.f32.mrb[7].mxu0 }
 0x2cc   :  { %856 = shalt.err (!%p853_p6)
}
 0x2cd   :  { %s857_s4 = scalar_lea.hbm %s1018_s5, 128 }
 0x2ce   :  { %p858_p7 = scmp.ne.s32.totalorder %s1018_s5, %s857_s4  ;;  %p861_p8 = scmp.lt.u32.totalorder %s857_s4, %s1018_s5 }
 0x2d0   :  { %p863_p9 = pnand %p861_p8, %p858_p7 }
 0x2d2   :  { %866 = shalt.err (!%p863_p9)
}
 0x2d3   :  { %619 = dma.vmem_to_hbm [thread:$0]  %s617_s22, 128, %s1018_s5, [#allocation4]  }
 0x2d4   :  { %871 = dma.done.wait [#allocation4], 128  }
 0x2d5   :  { %872 = vsyncadd [#allocation4], 4294967168 }
 0x2d6   :  { %623 = vsyncpa [#allocation3], 1 }
 0x2d7   :  { %624 = vsyncpa [#allocation6], 1 }
 0x2d8   :  { %625 = vsyncpa [#allocation4], 1 }

</bundles_post_ra>
